<compile_context>
chip_gen: v5e
topology: v5e:2x2
jax: 0.10.0
libtpu: 0.0.40
codegen_flags: <defaults>
</compile_context>

<pallas_src>
import functools
from math import floor

import jax
import jax.numpy as jnp
from jax import lax
from jax.experimental import pallas as pl
from jax.experimental.pallas import tpu as pltpu


def _compute_out_shape(height, width, kernel_size, stride, padding):
    out_height = floor((height + 2 * padding[0] - kernel_size[0]) / stride[0] + 1)
    out_width = floor((width + 2 * padding[1] - kernel_size[1]) / stride[1] + 1)
    return (out_height, out_width)


def _as_pair(v):
    return v if isinstance(v, tuple) else (v, v)


def _gemm_bias_relu_kernel(p_ref, w_ref, b_ref, o_ref):
    # p_ref: (1, K, M)    im2col patches for this batch element (pixels lane-dense)
    # w_ref: (Cout, K)    flattened weights, (cin, kh, kw) minor ordering
    # b_ref: (Cout, 1)    bias (f32), broadcasts along lanes
    # o_ref: (1, Cout, M) lane-dense, channel-major output
    acc = jnp.dot(w_ref[...], p_ref[0], preferred_element_type=jnp.float32)
    acc = acc + b_ref[...]
    o_ref[0] = jnp.maximum(acc, 0.0).astype(o_ref.dtype)


def conv_unit_forward(x_nchw, weight_oihw, bias, *, stride=1, padding=None,
                      use_bf16=False):
    """ConvUnit.forward: relu(conv2d(x)).  (B, Cin, H, W) -> (B, Cout, Ho, Wo)."""
    B, Cin, H, W = x_nchw.shape
    Cout, _, KH, KW = weight_oihw.shape
    SH, SW = _as_pair(stride)
    if padding is None:
        PH, PW = KH // 2, KW // 2          # per-dim default (non-square safe)
    else:
        PH, PW = _as_pair(padding)
    Ho, Wo = _compute_out_shape(H, W, (KH, KW), (SH, SW), (PH, PW))
    M = Ho * Wo
    K = Cin * KH * KW

    # im2col in the wrapper (XLA grouped conv with an identity kernel).
    # Padding + stride are handled here, so no padded HBM copy and no
    # in-kernel strided slices.  Channel ordering of the output is
    # (cin, kh, kw), exactly matching OIHW flattening below.
    patches = lax.conv_general_dilated_patches(
        x_nchw, (KH, KW), (SH, SW), [(PH, PH), (PW, PW)],
        dimension_numbers=("NCHW", "OIHW", "NCHW"))      # (B, K, Ho, Wo)
    patches = patches.reshape(B, K, M)                    # free reshape

    w_flat = weight_oihw.reshape(Cout, K)                 # (o, (i, kh, kw))
    b2d = bias.reshape(Cout, 1).astype(jnp.float32)

    if use_bf16:
        # MXU-bound shapes only; accumulation stays f32 inside the kernel.
        patches = patches.astype(jnp.bfloat16)
        w_flat = w_flat.astype(jnp.bfloat16)

    in_itemsize = jnp.dtype(patches.dtype).itemsize
    out_itemsize = jnp.dtype(x_nchw.dtype).itemsize
    cost = pl.CostEstimate(
        flops=2 * B * M * Cout * K,
        transcendentals=0,
        bytes_accessed=(patches.size + w_flat.size) * in_itemsize
        + (b2d.size + B * Cout * M) * out_itemsize,
    )

    out = pl.pallas_call(
        _gemm_bias_relu_kernel,
        out_shape=jax.ShapeDtypeStruct((B, Cout, M), x_nchw.dtype),
        grid_spec=pltpu.PrefetchScalarGridSpec(
            num_scalar_prefetch=0,
            grid=(B,),   # 2 parallel steps: feeds both v7x TCs; ~0.7us on 1-TC chips
            in_specs=[
                pl.BlockSpec((1, K, M), lambda b: (b, 0, 0)),
                pl.BlockSpec((Cout, K), lambda b: (0, 0)),
                pl.BlockSpec((Cout, 1), lambda b: (0, 0)),
            ],
            out_specs=pl.BlockSpec((1, Cout, M), lambda b: (b, 0, 0)),
        ),
        compiler_params=pltpu.CompilerParams(
            dimension_semantics=("parallel",),
            vmem_limit_bytes=32 * 1024 * 1024,
        ),
        cost_estimate=cost,
    )(patches, w_flat, b2d)

    # Output is already channel-major per batch element; only a free reshape.
    return out.reshape(B, Cout, Ho, Wo)


if __name__ == "__main__":
    # ConvUnit(in_channels=4, out_channels=8, height=16, width=16, kernel_size=5)
    B, Cin, Cout, H, W, Kk = 2, 4, 8, 16, 16, 5
    stride, padding = 1, Kk // 2

    key = jax.random.PRNGKey(0)
    kx, kw, kb = jax.random.split(key, 3)
    x = jax.random.normal(kx, (B, Cin, H, W), dtype=jnp.float32)
    # Deterministic synthetic parameters (shapes match nn.Conv2d(Cin, Cout, 5)).
    fan_in = Cin * Kk * Kk
    bound = 1.0 / (fan_in ** 0.5)
    weight = jax.random.uniform(kw, (Cout, Cin, Kk, Kk), jnp.float32, -bound, bound)
    bias = jax.random.uniform(kb, (Cout,), jnp.float32, -bound, bound)

    out = conv_unit_forward(x, weight, bias, stride=stride, padding=padding)
    out = jax.block_until_ready(out)

    # Reference check against XLA's conv (same semantics as F.relu(conv2d(x))).
    ref = lax.conv_general_dilated(
        x, weight, window_strides=(stride, stride),
        padding=[(padding, padding), (padding, padding)],
        dimension_numbers=("NCHW", "OIHW", "NCHW"))
    ref = jnp.maximum(ref + bias[None, :, None, None], 0.0)
    assert out.shape == (B, Cout, H, W)
    assert jnp.allclose(out, ref, atol=1e-4, rtol=1e-4)

    print("KERNEL_OK")
</pallas_src>

<mosaic_0001>
module attributes {stable_mosaic.version = 11 : i64} {
  func.func @_gemm_bias_relu_kernel(%arg0: i32, %arg1: memref<1x100x256xf32, #tpu.memory_space<vmem>>, %arg2: memref<8x100xf32, #tpu.memory_space<vmem>>, %arg3: memref<8x1xf32, #tpu.memory_space<vmem>>, %arg4: memref<1x8x256xf32, #tpu.memory_space<vmem>>) attributes {dimension_semantics = [#tpu.dimension_semantics<parallel>], iteration_bounds = array<i64: 2>, scalar_prefetch = 0 : i64, scratch_operands = 0 : i64, tpu.core_type = #tpu.core_type<tc>, window_params = [{transform_indices = @transform_0, window_bounds = array<i64: 1, 100, 256>}, {pipeline_mode = #tpu.pipeline_mode<synchronous>, transform_indices = @transform_1, window_bounds = array<i64: 8, 100>}, {pipeline_mode = #tpu.pipeline_mode<synchronous>, transform_indices = @transform_2, window_bounds = array<i64: 8, 1>}, {transform_indices = @transform_3, window_bounds = array<i64: 1, 8, 256>}]} {
    %c0 = arith.constant 0 : index
    %c0_0 = arith.constant 0 : index
    %0 = vector.load %arg2[%c0, %c0_0] : memref<8x100xf32, #tpu.memory_space<vmem>>, vector<8x100xf32>
    %c0_1 = arith.constant 0 : index
    %c0_2 = arith.constant 0 : index
    %c0_3 = arith.constant 0 : index
    %1 = vector.load %arg1[%c0_1, %c0_2, %c0_3] : memref<1x100x256xf32, #tpu.memory_space<vmem>>, vector<1x100x256xf32>
    %2 = vector.shape_cast %1 : vector<1x100x256xf32> to vector<100x256xf32>
    %cst = arith.constant dense<0.000000e+00> : vector<8x256xf32>
    %3 = tpu.matmul %0, %2, %cst {dimension_numbers = #tpu.dot_dimension_numbers<[1], [0], [0], [1], [0, 0, 1, 1], [], []>} : vector<8x100xf32>, vector<100x256xf32>, vector<8x256xf32> -> vector<8x256xf32>
    %c0_4 = arith.constant 0 : index
    %c0_5 = arith.constant 0 : index
    %4 = vector.load %arg3[%c0_4, %c0_5] : memref<8x1xf32, #tpu.memory_space<vmem>>, vector<8x1xf32>
    %5 = vector.broadcast %4 : vector<8x1xf32> to vector<8x256xf32>
    %6 = arith.addf %3, %5 : vector<8x256xf32>
    %cst_6 = arith.constant 0.000000e+00 : f32
    %7 = vector.broadcast %cst_6 : f32 to vector<8x256xf32>
    %8 = arith.maximumf %6, %7 : vector<8x256xf32>
    %c0_7 = arith.constant 0 : index
    %c0_8 = arith.constant 0 : index
    %c0_9 = arith.constant 0 : index
    %9 = vector.load %arg4[%c0_7, %c0_8, %c0_9] : memref<1x8x256xf32, #tpu.memory_space<vmem>>, vector<1x8x256xf32>
    %10 = vector.shape_cast %9 : vector<1x8x256xf32> to vector<8x256xf32>
    %11 = vector.shape_cast %8 : vector<8x256xf32> to vector<1x8x256xf32>
    tpu.vector_store %arg4[%c0_7, %c0_8, %c0_9], %11 {strides = array<i32>} : memref<1x8x256xf32, #tpu.memory_space<vmem>>, vector<1x8x256xf32>,
    return
  }
  func.func @transform_0(%arg0: i32) -> (i32, i32, i32) {
    %c0_i32 = arith.constant 0 : i32
    %c0_i32_0 = arith.constant 0 : i32
    %c0_i32_1 = arith.constant 0 : i32
    return %arg0, %c0_i32, %c0_i32_0 : i32, i32, i32
  }
  func.func @transform_1(%arg0: i32) -> (i32, i32) {
    %c0_i32 = arith.constant 0 : i32
    %c0_i32_0 = arith.constant 0 : i32
    %c0_i32_1 = arith.constant 0 : i32
    return %c0_i32, %c0_i32_0 : i32, i32
  }
  func.func @transform_2(%arg0: i32) -> (i32, i32) {
    %c0_i32 = arith.constant 0 : i32
    %c0_i32_0 = arith.constant 0 : i32
    %c0_i32_1 = arith.constant 0 : i32
    return %c0_i32, %c0_i32_0 : i32, i32
  }
  func.func @transform_3(%arg0: i32) -> (i32, i32, i32) {
    %c0_i32 = arith.constant 0 : i32
    %c0_i32_0 = arith.constant 0 : i32
    %c0_i32_1 = arith.constant 0 : i32
    return %arg0, %c0_i32, %c0_i32_0 : i32, i32, i32
  }
}

</mosaic_0001>

<bundles_post_ra>
// kernel: tpu_custom_call.1
= control target key start
LH: loop header
LB: loop body
LE: loop exit
PB: predicated region body
PF: predicated region fallthrough
CT: control target
= control target key end

     0   :  { %8 = vsyncpa [#allocation3], 0  ;;  %s595_s0 = inlined_call_operand.vmem [shape: f32[2,100,256], index: 0, kind: input, shape index: {}]   ;;  %s596_s1 = inlined_call_operand.vmem [shape: f32[8,100], index: 1, kind: input, shape index: {}]   ;;  %s597_s2 = inlined_call_operand.vmem [shape: f32[8,1], index: 2, kind: input, shape index: {}]   ;;  %s598_s3 = inlined_call_operand.hbm [shape: f32[2,8,256], index: 3, kind: output, shape index: {}]  }
   0x1   :  { %10 = vsyncpa [#allocation3 + $0x1], 0  ;;  %s476_s12 = smov 0   ;;  %s478_s13 = smov 0  }
   0x2   :  { %s480_s14 = smov 0   ;;  %s482_s15 = smov 0  }
   0x3 LB: > { %s497_s16 = sadd.s32 4294967295, %s453_s15   ;;  %s333_s17 = sadd.s32 4294967294, %s453_s15   ;;  %s453_s15 = sphi %s482_s15, %s604_s15   ;;  %s449_s14 = sphi %s480_s14, %s603_s14   ;;  %s445_s13 = sphi %s478_s13, %s602_s13   ;;  %s441_s12 = sphi %s476_s12, %s601_s12  }
   0x4   : > { %s501_s18 = sadd.s32 1, %s453_s15   ;;  %s91_s19 = sadd.s32 1, %s449_s14 }
   0x5   : > { %s88_s20 = ssub.s32 %s453_s15, %s501_s18  ;;  %p101_p0 = scmp.ne.s32.totalorder %s449_s14, %s445_s13 }
   0x6   : > { %p89_p1 = scmp.eq.s32.totalorder %s88_s20, 0  ;;  %p102_p2 = scmp.eq.s32.totalorder %s497_s16, 1 }
   0x7   : > { %p107_p3 = scmp.ne.s32.totalorder %s445_s13, %s441_s12  ;;  %p108_p4 = scmp.eq.s32.totalorder %s333_s17, 1 }
   0x8   : > { %s512_s21 = scalar_select %p89_p1, %s449_s14, %s91_s19  }
   0x9   : > { %p514_p5 = por %p102_p2, %p101_p0  ;;  %p518_p6 = por %p108_p4, %p107_p3 }
   0xa   : > { %p336_p7 = scmp.ge.s32.totalorder %s453_s15, 1  ;;  %p140_p8 = scmp.lt.s32.totalorder %s453_s15, 3 }
   0xc   : > { %p141_p9 = pnand %p336_p7, %p140_p8 }
   0xd   : > { %p164_p10 = scmp.lt.s32.totalorder (!%p141_p9), %s497_s16, 1  ;;  %s161_s6 = sand.u32 (!%p141_p9), 1, %s445_s13  }
   0xe   : > { %144 = sbr.rel (%p141_p9) target bundleno = 184 (0xb8), region = 32  ;;  %s337_s7 = sshll.u32 (!%p141_p9), %s161_s6, 4 }
   0xf   : > { %s348_s8 = sshll.u32 (!%p141_p9), %s497_s16, 4  ;;  %s163_s17 = scalar_lea.vmem (!%p141_p9), [#allocation2], %s337_s7 }
  0x10   : > { %s269_s11 = scalar_lea.hbm (!%p141_p9), %s598_s3, %s348_s8  ;;  %s271_s19 = sshll.u32 (!%p141_p9), %s163_s17, 4  ;;  %s272_s19 = int_to_ptr.vmem [resolvable:$true] %s271_s19 }
  0x11   : > { %s273_s20 = sshll.u32 (!%p141_p9), %s269_s11, 4  ;;  %s411_s28 = scalar_lea.hbm (!%p141_p9), %s598_s3, 32  ;;  %s274_s20 = int_to_ptr.hbm [resolvable:$true] %s273_s20 }
  0x12   : > { %s405_s24 = sshra.s32 (!%p141_p9), %s274_s20, 4  ;;  %s406_s24 = int_to_ptr.hbm [resolvable:$true] %s405_s24 }
  0x13   : > { %v196_v0 = vld [vmem:[%s597_s2] sm:$0xff]  ;;  %s165_s26 = scalar_select %p164_p10, %s497_s16, 1  ;;  %v455_v1 = vmov 0   ;;  %vm206_vm0 = vcmask 1043456   ;;  %vm202_vm1 = vcmask 818176  }
  0x14   : > { %390 = vset.pattern.permute.xlu0 %v455_v1  ;;  %v169_v28 = vld [vmem:[%s596_s1] sm:$0xff]  ;;  %s258_s16 = scalar_lea.sflag [#allocation3], %s161_s6  ;;  %s407_s25 = scalar_lea.hbm %s406_s24, 16 }
  0x15   : > { %199 = vperm.xlu0 %390, %v196_v0   ;;  %s349_s27 = smul.u32 208, %s165_s26  ;;  %p408_p11 = scmp.ne.s32.totalorder %s406_s24, %s407_s25 }
  0x16   : > { %p412_p0 = scmp.lt.s32.totalorder %s406_s24, %s598_s3  ;;  %p413_p1 = scmp.lt.s32.totalorder %s411_s28, %s407_s25 }
  0x17   : > { %s532_s30 = scalar_lea.vmem %s595_s0, %s349_s27  ;;  %p409_p12 = pnand %p408_p11, %p514_p5 }
  0x18   : > { %v194_v2 = vld [vmem:[%s532_s30 + $0xc0] sm:$0xf]  ;;  %v195_v3 = vld [vmem:[%s532_s30 + $0xc8] sm:$0xf]  ;;  %v192_v4 = vld [vmem:[%s532_s30 + $0xb0] sm:$0xff]  ;;  %p414_p2 = por %p413_p1, %p412_p0 }
  0x19   : > { %339 = vmatpush.msk.msra.mxu0 %vm206_vm0, %v194_v2  ;;  %341 = vmatpush.msk.msra.mxu1 %vm206_vm0, %v195_v3  ;;  %v193_v5 = vld [vmem:[%s532_s30 + $0xb8] sm:$0xff]  ;;  %v190_v6 = vld [vmem:[%s532_s30 + $0xa0] sm:$0xff]  ;;  %v191_v7 = vld [vmem:[%s532_s30 + $0xa8] sm:$0xff]  ;;  %p410_p13 = pneg %p409_p12 }
  0x1a   : > { %v188_v8 = vld [vmem:[%s532_s30 + $0x90] sm:$0xff]  ;;  %v189_v9 = vld [vmem:[%s532_s30 + $0x98] sm:$0xff]  ;;  %v186_v10 = vld [vmem:[%s532_s30 + $0x80] sm:$0xff] }
  0x1b   : > { %217 = vmatpush.msra.mxu0 %v192_v4  ;;  %237 = vmatpush.msra.mxu1 %v193_v5  ;;  %v187_v11 = vld [vmem:[%s532_s30 + $0x88] sm:$0xff]  ;;  %v184_v12 = vld [vmem:[%s532_s30 + $0x70] sm:$0xff]  ;;  %v185_v13 = vld [vmem:[%s532_s30 + $0x78] sm:$0xff]  ;;  %p415_p3 = pnand %p414_p2, %p410_p13 }
  0x1c   : > { %v182_v14 = vld [vmem:[%s532_s30 + $0x60] sm:$0xff]  ;;  %v183_v15 = vld [vmem:[%s532_s30 + $0x68] sm:$0xff]  ;;  %v180_v16 = vld [vmem:[%s532_s30 + $0x50] sm:$0xff] }
  0x1d   : > { %218 = vmatpush.msra.mxu0 %v190_v6  ;;  %238 = vmatpush.msra.mxu1 %v191_v7  ;;  %v181_v17 = vld [vmem:[%s532_s30 + $0x58] sm:$0xff]  ;;  %v178_v18 = vld [vmem:[%s532_s30 + $0x40] sm:$0xff]  ;;  %v179_v19 = vld [vmem:[%s532_s30 + $0x48] sm:$0xff] }
  0x1e   : > { %v176_v20 = vld [vmem:[%s532_s30 + $0x30] sm:$0xff]  ;;  %v177_v21 = vld [vmem:[%s532_s30 + $0x38] sm:$0xff]  ;;  %v174_v22 = vld [vmem:[%s532_s30 + $0x20] sm:$0xff] }
  0x1f   : > { %219 = vmatpush.msra.mxu0 %v188_v8  ;;  %239 = vmatpush.msra.mxu1 %v189_v9  ;;  %v175_v23 = vld [vmem:[%s532_s30 + $0x28] sm:$0xff]  ;;  %v172_v24 = vld [vmem:[%s532_s30 + $0x10] sm:$0xff]  ;;  %v173_v25 = vld [vmem:[%s532_s30 + $0x18] sm:$0xff] }
  0x20   : > { %v170_v26 = vld [vmem:[%s532_s30] sm:$0xff]  ;;  %v171_v27 = vld [vmem:[%s532_s30 + $0x8] sm:$0xff] }
  0x21   : > { %220 = vmatpush.msra.mxu0 %v186_v10  ;;  %240 = vmatpush.msra.mxu1 %v187_v11 }
  0x23   : > { %221 = vmatpush.msra.mxu0 %v184_v12  ;;  %241 = vmatpush.msra.mxu1 %v185_v13 }
  0x25   : > { %222 = vmatpush.msra.mxu0 %v182_v14  ;;  %242 = vmatpush.msra.mxu1 %v183_v15 }
  0x27   : > { %223 = vmatpush.msra.mxu0 %v180_v16  ;;  %243 = vmatpush.msra.mxu1 %v181_v17 }
  0x29   : > { %224 = vmatpush.msra.mxu0 %v178_v18  ;;  %244 = vmatpush.msra.mxu1 %v179_v19 }
  0x2b   : > { %225 = vmatpush.msra.mxu0 %v176_v20  ;;  %245 = vmatpush.msra.mxu1 %v177_v21 }
  0x2d   : > { %226 = vmatpush.msra.mxu0 %v174_v22  ;;  %246 = vmatpush.msra.mxu1 %v175_v23 }
  0x2f   : > { %227 = vmatpush.msra.mxu0 %v172_v24  ;;  %247 = vmatpush.msra.mxu1 %v173_v25 }
  0x31   : > { %228 = vmatpush.msra.mxu0 %v170_v26  ;;  %248 = vmatpush.msra.mxu1 %v171_v27 }
  0x32   : > { %340 = vmatmul.msk.f32.vlgmr.msra.gmra.mxu0 %vm202_vm1, %v169_v28  ;;  %342 = vmatmul.msk.f32.vlgmr.msra.gmra.mxu1 %vm202_vm1, %v169_v28 }
  0x87   : > { %v200_v29 = vpop.permute.xlu0 %199 }
  0xaf   : > { %v230_v30 = vpop.f32.mrf.mxu0  ;;  %v250_v31 = vpop.f32.mrf.mxu1 }
  0xb0   : > { %v231_v32 = vadd.f32 %v230_v30, %v200_v29  ;;  %v251_v33 = vadd.f32 %v250_v31, %v200_v29 }
  0xb2   : > { %v253_v34 = vmax.f32 %v231_v32, 0.0  ;;  %v254_v35 = vmax.f32 %v251_v33, 0.0 }
  0xb4   : > { %255 = vst [vmem:[%s163_s17] sm:$0xff] %v253_v34 }
  0xb5   : > { %256 = vst [vmem:[%s163_s17 + $0x8] sm:$0xff] %v254_v35 }
  0xb6   : > { %418 = shalt.err (!%p415_p3)
}
  0xb7   : > { %350 = dma.vmem_to_hbm [thread:$0]  (%p514_p5), %s272_s19, 256, %s274_s20, %s258_s16  }
  0xb8 PF: > { %p356_p4 = scmp.ge.s32.totalorder %s453_s15, 2  ;;  %s285_s4 = sand.u32 1, %s441_s12  }
  0xb9   : > { %s286_s5 = scalar_lea.sflag [#allocation3], %s285_s4 }
  0xba   : > { %p353_p7 = pnand %p356_p4, %p518_p6 }
  0xbc   : > { %p354_p8 = pneg %p353_p7 }
  0xbe   : > { %436 = dma.done.wait (%p354_p8), %s286_s5, 256  }
  0xbf   : > { %438 = vsyncadd (%p354_p8), %s286_s5, 4294967040  ;;  %p13_p9 = scmp.ge.s32.totalorder %s501_s18, 4   ;;  %s601_s12 = smov %s445_s13 }
  0xc0   : > { %s602_s13 = smov %s449_s14  ;;  %s603_s14 = smov %s512_s21 }
  0xc1   : > { %s604_s15 = smov %s501_s18  ;;  %15 = sbr.rel (!%p13_p9) target bundleno = 3 (0x3), region = 67 }
  0xc6   :  { %292 = vsyncpa [#allocation3], 1 }
  0xc7   :  { %294 = vsyncpa [#allocation3 + $0x1], 1 }

</bundles_post_ra>
